<compile_context>
chip_gen: v6e
topology: v6e:2x2x1
jax: 0.10.0
libtpu: 0.0.40
codegen_flags: <defaults>
</compile_context>

<pallas_src>
import functools

import jax
import jax.numpy as jnp
from jax.experimental import pallas as pl
from jax.experimental.pallas import tpu as pltpu

ATOM_FDIM = 75   # the module hard-codes 75 inside message_pass
N_ATOMS = 8
DEPTH = 3
BATCH = 16       # molecules
B_BLK = 8        # molecules per grid block  (B_BLK * N_ATOMS rows per MXU dot)


def _mp_kernel(h_ref, a_ref, wt_ref, b_ref, out_ref, *, depth):
    # h_ref : (M, Fp)      packed atom features of B_BLK molecules (M = B_BLK*N)
    # a_ref : (M, M)       block-diagonal adjacency for those molecules
    # wt_ref: (2*Fp, Fp)   padded U.weight.T  (rows [0:F] for H, [Fp:Fp+F] for M)
    # b_ref : (1, Fp)      padded bias
    # out_ref: (B_BLK, Fp) per-molecule mol_vec
    n_mols, fp = out_ref.shape

    h = h_ref[...]          # register-resident across the whole depth loop
    a = a_ref[...]
    wt = wt_ref[...]
    b = b_ref[...]

    for _ in range(depth):  # depth is tiny and static -> fully unrolled
        # message passing: m[v] = sum_{w in N(v)} h[w]  ==  A_blockdiag @ H  (MXU)
        m = jnp.dot(a, h, preferred_element_type=jnp.float32)
        # fused linear: relu( cat(H, M) @ Wt + b )  -- single MXU dot per step
        hm = jnp.concatenate([h, m], axis=-1)                 # (M, 2*Fp), lane-dense
        z = jnp.dot(hm, wt, preferred_element_type=jnp.float32) + b
        h = jnp.maximum(z, 0.0)

    # mol_vec per molecule: sum over that molecule's atoms
    out_ref[...] = jnp.sum(h.reshape(n_mols, -1, fp), axis=1)


def mp_forward(h, adj, w, b, *, depth=DEPTH, block_b=B_BLK):
    """h: (B, N, F) atom features; adj: (B, N, N); w: (F, 2F) Linear weight; b: (F,)."""
    B, N, F = h.shape
    assert B % block_b == 0, "batch must be a multiple of the block size"
    G = B // block_b
    M = block_b * N
    Fp = ((F + 127) // 128) * 128        # lane-dense padded feature dim

    f32 = jnp.float32
    # zero-pad features / weights / bias so pad lanes stay exactly 0 through ReLU
    h_p = jnp.zeros((B, N, Fp), f32).at[:, :, :F].set(h.astype(f32))
    wt = w.T.astype(f32)                                    # (2F, F)
    wt_p = jnp.zeros((2 * Fp, Fp), f32)
    wt_p = wt_p.at[:F, :F].set(wt[:F])                      # H half
    wt_p = wt_p.at[Fp:Fp + F, :F].set(wt[F:])               # M half
    b_p = jnp.zeros((1, Fp), f32).at[0, :F].set(b.astype(f32))

    # pack block_b molecules per grid block: flat H slab + block-diagonal A
    h_g = h_p.reshape(G, M, Fp)
    a_g = adj.astype(f32).reshape(G, block_b, N, N)
    eye = jnp.eye(block_b, dtype=f32)
    a_bd = jnp.einsum('bc,gbvw->gbvcw', eye, a_g).reshape(G, M, M)

    out = pl.pallas_call(
        functools.partial(_mp_kernel, depth=depth),
        out_shape=jax.ShapeDtypeStruct((G, block_b, Fp), f32),
        grid=(G,),
        in_specs=[
            pl.BlockSpec((None, M, Fp), lambda g: (g, 0, 0)),   # H block
            pl.BlockSpec((None, M, M), lambda g: (g, 0, 0)),    # block-diag A
            pl.BlockSpec((2 * Fp, Fp), lambda g: (0, 0)),       # Wt (shared)
            pl.BlockSpec((1, Fp), lambda g: (0, 0)),            # bias (shared)
        ],
        out_specs=pl.BlockSpec((None, block_b, Fp), lambda g: (g, 0, 0)),
        compiler_params=pltpu.CompilerParams(
            dimension_semantics=("parallel",)),
    )(h_g, a_bd, wt_p, b_p)

    return out.reshape(B, Fp)[:, :F]     # (B, F): one mol_vec per molecule


def mp_reference(h, adj, w, b, depth=DEPTH):
    wt = w.T
    for _ in range(depth):
        m = jnp.einsum('bvw,bwf->bvf', adj, h)
        h = jax.nn.relu(jnp.concatenate([h, m], axis=-1) @ wt + b)
    return jnp.sum(h, axis=1)            # (B, F)


if __name__ == "__main__":
    key = jax.random.PRNGKey(0)
    k1, k2, k3, k4 = jax.random.split(key, 4)

    # atom features, one block of molecules
    h = jax.random.normal(k1, (BATCH, N_ATOMS, ATOM_FDIM), dtype=jnp.float32)

    # symmetric random adjacency per molecule, no self-loops
    raw = jax.random.uniform(k2, (BATCH, N_ATOMS, N_ATOMS))
    adj = (raw + jnp.swapaxes(raw, -1, -2) > 1.0).astype(jnp.float32)
    adj = adj * (1.0 - jnp.eye(N_ATOMS, dtype=jnp.float32))

    # deterministic init of nn.Linear(2*atom_fdim, atom_fdim)
    bound = 1.0 / jnp.sqrt(2.0 * ATOM_FDIM)
    w = jax.random.uniform(k3, (ATOM_FDIM, 2 * ATOM_FDIM),
                           minval=-bound, maxval=bound, dtype=jnp.float32)
    b = jax.random.uniform(k4, (ATOM_FDIM,),
                           minval=-bound, maxval=bound, dtype=jnp.float32)

    out = mp_forward(h, adj, w, b)
    jax.block_until_ready(out)

    ref = mp_reference(h, adj, w, b)
    assert out.shape == (BATCH, ATOM_FDIM)
    assert jnp.allclose(out, ref, atol=1e-4, rtol=1e-4)
    print("KERNEL_OK")
</pallas_src>

<mosaic_0001>
module attributes {stable_mosaic.version = 11 : i64} {
  func.func @_mp_kernel(%arg0: i32, %arg1: memref<1x64x128xf32, #tpu.memory_space<vmem>>, %arg2: memref<1x64x64xf32, #tpu.memory_space<vmem>>, %arg3: memref<256x128xf32, #tpu.memory_space<vmem>>, %arg4: memref<1x128xf32, #tpu.memory_space<vmem>>, %arg5: memref<1x8x128xf32, #tpu.memory_space<vmem>>) attributes {dimension_semantics = [#tpu.dimension_semantics<parallel>], iteration_bounds = array<i64: 2>, scalar_prefetch = 0 : i64, scratch_operands = 0 : i64, tpu.core_type = #tpu.core_type<tc>, window_params = [{transform_indices = @transform_0, window_bounds = array<i64: 1, 64, 128>}, {transform_indices = @transform_1, window_bounds = array<i64: 1, 64, 64>}, {pipeline_mode = #tpu.pipeline_mode<synchronous>, transform_indices = @transform_2, window_bounds = array<i64: 256, 128>}, {pipeline_mode = #tpu.pipeline_mode<synchronous>, transform_indices = @transform_3, window_bounds = array<i64: 1, 128>}, {transform_indices = @transform_4, window_bounds = array<i64: 1, 8, 128>}]} {
    %c0 = arith.constant 0 : index
    %c0_0 = arith.constant 0 : index
    %c0_1 = arith.constant 0 : index
    %0 = vector.load %arg1[%c0, %c0_0, %c0_1] : memref<1x64x128xf32, #tpu.memory_space<vmem>>, vector<1x64x128xf32>
    %1 = vector.shape_cast %0 : vector<1x64x128xf32> to vector<64x128xf32>
    %c0_2 = arith.constant 0 : index
    %c0_3 = arith.constant 0 : index
    %c0_4 = arith.constant 0 : index
    %2 = vector.load %arg2[%c0_2, %c0_3, %c0_4] : memref<1x64x64xf32, #tpu.memory_space<vmem>>, vector<1x64x64xf32>
    %3 = vector.shape_cast %2 : vector<1x64x64xf32> to vector<64x64xf32>
    %c0_5 = arith.constant 0 : index
    %c0_6 = arith.constant 0 : index
    %4 = vector.load %arg3[%c0_5, %c0_6] : memref<256x128xf32, #tpu.memory_space<vmem>>, vector<256x128xf32>
    %c0_7 = arith.constant 0 : index
    %c0_8 = arith.constant 0 : index
    %5 = vector.load %arg4[%c0_7, %c0_8] : memref<1x128xf32, #tpu.memory_space<vmem>>, vector<1x128xf32>
    %cst = arith.constant dense<0.000000e+00> : vector<64x128xf32>
    %6 = tpu.matmul %3, %1, %cst {dimension_numbers = #tpu.dot_dimension_numbers<[1], [0], [0], [1], [0, 0, 1, 1], [], []>} : vector<64x64xf32>, vector<64x128xf32>, vector<64x128xf32> -> vector<64x128xf32>
    %7 = tpu.concatenate %1, %6 in 1 : vector<64x128xf32>, vector<64x128xf32> -> vector<64x256xf32>
    %cst_9 = arith.constant dense<0.000000e+00> : vector<64x128xf32>
    %8 = tpu.matmul %7, %4, %cst_9 {dimension_numbers = #tpu.dot_dimension_numbers<[1], [0], [0], [1], [0, 0, 1, 1], [], []>} : vector<64x256xf32>, vector<256x128xf32>, vector<64x128xf32> -> vector<64x128xf32>
    %9 = vector.broadcast %5 : vector<1x128xf32> to vector<64x128xf32>
    %10 = arith.addf %8, %9 : vector<64x128xf32>
    %cst_10 = arith.constant 0.000000e+00 : f32
    %11 = vector.broadcast %cst_10 : f32 to vector<64x128xf32>
    %12 = arith.maximumf %10, %11 : vector<64x128xf32>
    %cst_11 = arith.constant dense<0.000000e+00> : vector<64x128xf32>
    %13 = tpu.matmul %3, %12, %cst_11 {dimension_numbers = #tpu.dot_dimension_numbers<[1], [0], [0], [1], [0, 0, 1, 1], [], []>} : vector<64x64xf32>, vector<64x128xf32>, vector<64x128xf32> -> vector<64x128xf32>
    %14 = tpu.concatenate %12, %13 in 1 : vector<64x128xf32>, vector<64x128xf32> -> vector<64x256xf32>
    %cst_12 = arith.constant dense<0.000000e+00> : vector<64x128xf32>
    %15 = tpu.matmul %14, %4, %cst_12 {dimension_numbers = #tpu.dot_dimension_numbers<[1], [0], [0], [1], [0, 0, 1, 1], [], []>} : vector<64x256xf32>, vector<256x128xf32>, vector<64x128xf32> -> vector<64x128xf32>
    %16 = vector.broadcast %5 : vector<1x128xf32> to vector<64x128xf32>
    %17 = arith.addf %15, %16 : vector<64x128xf32>
    %cst_13 = arith.constant 0.000000e+00 : f32
    %18 = vector.broadcast %cst_13 : f32 to vector<64x128xf32>
    %19 = arith.maximumf %17, %18 : vector<64x128xf32>
    %cst_14 = arith.constant dense<0.000000e+00> : vector<64x128xf32>
    %20 = tpu.matmul %3, %19, %cst_14 {dimension_numbers = #tpu.dot_dimension_numbers<[1], [0], [0], [1], [0, 0, 1, 1], [], []>} : vector<64x64xf32>, vector<64x128xf32>, vector<64x128xf32> -> vector<64x128xf32>
    %21 = tpu.concatenate %19, %20 in 1 : vector<64x128xf32>, vector<64x128xf32> -> vector<64x256xf32>
    %cst_15 = arith.constant dense<0.000000e+00> : vector<64x128xf32>
    %22 = tpu.matmul %21, %4, %cst_15 {dimension_numbers = #tpu.dot_dimension_numbers<[1], [0], [0], [1], [0, 0, 1, 1], [], []>} : vector<64x256xf32>, vector<256x128xf32>, vector<64x128xf32> -> vector<64x128xf32>
    %23 = vector.broadcast %5 : vector<1x128xf32> to vector<64x128xf32>
    %24 = arith.addf %22, %23 : vector<64x128xf32>
    %cst_16 = arith.constant 0.000000e+00 : f32
    %25 = vector.broadcast %cst_16 : f32 to vector<64x128xf32>
    %26 = arith.maximumf %24, %25 : vector<64x128xf32>
    %27 = vector.shape_cast %26 : vector<64x128xf32> to vector<8x8x128xf32>
    %cst_17 = arith.constant dense<0.000000e+00> : vector<8x128xf32>
    %28 = vector.multi_reduction <add>, %27, %cst_17 [1] : vector<8x8x128xf32> to vector<8x128xf32>
    %c0_18 = arith.constant 0 : index
    %c0_19 = arith.constant 0 : index
    %c0_20 = arith.constant 0 : index
    %29 = vector.load %arg5[%c0_18, %c0_19, %c0_20] : memref<1x8x128xf32, #tpu.memory_space<vmem>>, vector<1x8x128xf32>
    %30 = vector.shape_cast %29 : vector<1x8x128xf32> to vector<8x128xf32>
    %31 = vector.shape_cast %28 : vector<8x128xf32> to vector<1x8x128xf32>
    tpu.vector_store %arg5[%c0_18, %c0_19, %c0_20], %31 {strides = array<i32>} : memref<1x8x128xf32, #tpu.memory_space<vmem>>, vector<1x8x128xf32>,
    return
  }
  func.func @transform_0(%arg0: i32) -> (i32, i32, i32) {
    %c0_i32 = arith.constant 0 : i32
    %c0_i32_0 = arith.constant 0 : i32
    %c0_i32_1 = arith.constant 0 : i32
    return %arg0, %c0_i32, %c0_i32_0 : i32, i32, i32
  }
  func.func @transform_1(%arg0: i32) -> (i32, i32, i32) {
    %c0_i32 = arith.constant 0 : i32
    %c0_i32_0 = arith.constant 0 : i32
    %c0_i32_1 = arith.constant 0 : i32
    return %arg0, %c0_i32, %c0_i32_0 : i32, i32, i32
  }
  func.func @transform_2(%arg0: i32) -> (i32, i32) {
    %c0_i32 = arith.constant 0 : i32
    %c0_i32_0 = arith.constant 0 : i32
    %c0_i32_1 = arith.constant 0 : i32
    return %c0_i32, %c0_i32_0 : i32, i32
  }
  func.func @transform_3(%arg0: i32) -> (i32, i32) {
    %c0_i32 = arith.constant 0 : i32
    %c0_i32_0 = arith.constant 0 : i32
    %c0_i32_1 = arith.constant 0 : i32
    return %c0_i32, %c0_i32_0 : i32, i32
  }
  func.func @transform_4(%arg0: i32) -> (i32, i32, i32) {
    %c0_i32 = arith.constant 0 : i32
    %c0_i32_0 = arith.constant 0 : i32
    %c0_i32_1 = arith.constant 0 : i32
    return %arg0, %c0_i32, %c0_i32_0 : i32, i32, i32
  }
}

</mosaic_0001>

<bundles_post_ra>
// kernel: tpu_custom_call.1
= control target key start
LH: loop header
LB: loop body
LE: loop exit
PB: predicated region body
PF: predicated region fallthrough
CT: control target
= control target key end

     0   :  { %s2356_s0 = inlined_call_operand.hbm [shape: f32[2,64,128], index: 0, kind: input, shape index: {}]   ;;  %s2357_s1 = inlined_call_operand.hbm [shape: f32[2,64,64], index: 1, kind: input, shape index: {}]   ;;  %s2358_s2 = inlined_call_operand.hbm [shape: f32[256,128], index: 2, kind: input, shape index: {}]   ;;  %s2359_s3 = inlined_call_operand.vmem [shape: f32[1,128], index: 3, kind: input, shape index: {}]   ;;  %s2360_s4 = inlined_call_operand.hbm [shape: f32[2,8,128], index: 4, kind: output, shape index: {}]  }
   0x1   :  { %2372 = sst [smem:[#allocation16_spill]] %s2356_s0 }
   0x2   :  { %2373 = sst [smem:[#allocation17_spill]] %s2358_s2 }
   0x3   :  { %9 = vsyncpa [#allocation3], 0 }
   0x4   :  { %11 = vsyncpa [#allocation3 + $0x1], 0 }
   0x5   :  { %12 = vsyncpa [#allocation6], 0 }
   0x6   :  { %14 = vsyncpa [#allocation6 + $0x1], 0 }
   0x7   :  { %15 = vsyncpa [#allocation4], 0 }
   0x8   :  { %17 = vsyncpa [#allocation4 + $0x1], 0  ;;  %s1789_s15 = smov 0   ;;  %s1791_s16 = smov 0  }
   0x9   :  { %s1793_s17 = smov 0   ;;  %s1795_s18 = smov 0  }
   0xa LB: > { %s1810_s19 = sadd.s32 4294967295, %s1756_s18   ;;  %s1192_s20 = sadd.s32 4294967294, %s1756_s18   ;;  %s1756_s18 = sphi %s1795_s18, %s2400_s18   ;;  %s1752_s17 = sphi %s1793_s17, %s2399_s17   ;;  %s1748_s16 = sphi %s1791_s16, %s2398_s16   ;;  %s1744_s15 = sphi %s1789_s15, %s2397_s15  }
   0xb   : > { %p43_p0 = scmp.ne.s32.totalorder %s1748_s16, %s1744_s15  ;;  %p2365_p1 = scmp.eq.s32.totalorder %s1810_s19, 0 }
   0xc   : > { %p141_p3 = scmp.eq.s32.totalorder %s1192_s20, 1  ;;  %p1193_p5 = scmp.ge.s32.totalorder %s1756_s18, 1 }
   0xd   : > { %p1819_p4 = por %p2365_p1, %p43_p0  ;;  %p148_p7 = scmp.lt.s32.totalorder %s1756_s18, 3 }
   0xe   : > { %p1824_p6 = por %p141_p3, %p43_p0  ;;  %s1758_s24 = smov [#allocation7]  }
   0xf   : > { %s2374_s21 = scalar_select %p1819_p4, 1, 0 }
  0x10   : > { %s2375_s22 = scalar_select %p1824_p6, 1, 0 }
  0x11   : > { %p1829_p8 = pnand %p1193_p5, %p148_p7  ;;  %s160_s25 = sshll.u32 %s1758_s24, 4  ;;  %s161_s25 = int_to_ptr.vmem [resolvable:$true] %s160_s25 }
  0x12   : > { %s1843_s27 = sadd.s32 1, %s1756_s18   ;;  %s30_s28 = sadd.s32 1, %s1752_s17 }
  0x13   : > { %p1548_p9 = pneg %p1829_p8  ;;  %s27_s29 = ssub.s32 %s1756_s18, %s1843_s27 }
  0x14   : > { %s1613_s30 = scalar_lea.vmem %s161_s25, 4096  ;;  %p1621_p5 = scmp.lt.s32.totalorder %s161_s25, %s161_s25 }
  0x15   : > { %p1838_p11 = pnand %p1548_p9, %p2365_p1  ;;  %p1614_p13 = scmp.ne.s32.totalorder %s161_s25, %s1613_s30 }
  0x16   : > { %p1622_p7 = scmp.lt.s32.totalorder %s1613_s30, %s1613_s30 }
  0x17   : > { %p1604_p12 = pneg %p1838_p11 }
  0x18   : > { %p1623_p10 = por %p1622_p7, %p1621_p5 }
  0x19   : > { %p1616_p0 = pnand %p1614_p13, %p1604_p12 }
  0x1b   : > { %p1617_p3 = pneg %p1616_p0 }
  0x1d   : > { %p1624_p2 = pnand %p1623_p10, %p1617_p3 }
  0x1f   : > { %1627 = shalt.err (!%p1624_p2)
}
  0x20   : > { %s2361_s5 = smov 128   ;;  %s2363_s6 = smov 8  }
  0x21   : > { %s2378_s2 = sld [smem:[#allocation17_spill]]  ;;  %p28_p2 = scmp.eq.s32.totalorder %s27_s29, 0 }
  0x22   : > { %p37_p9 = scmp.ne.s32.totalorder %s1752_s17, %s1748_s16  ;;  %p38_p10 = scmp.eq.s32.totalorder %s1756_s18, 0 }
  0x23   : > { %p1564_p12 = scmp.lt.s32.totalorder %s1756_s18, 2  ;;  %p2380_p0 = scmp.eq.s32.totalorder %s1810_s19, 1 }
  0x24   : > { %s1863_s9 = scalar_select %p28_p2, %s1752_s17, %s30_s28  }
  0x25   : > { %p39_p13 = por %p38_p10, %p37_p9  ;;  %p1867_p3 = por %p2380_p0, %p37_p9 }
  0x26   : > { %2379 = sst [smem:[#allocation13_spill]] %s1863_s9  ;;  %s177_s11 = sand.u32 1, %s1752_s17  }
  0x27   : > { %1551 = dma.hbm_to_vmem [thread:$0]  (!%p1838_p11), %s2378_s2, 4096, %s161_s25, [#allocation6], %s2361_s5, %s2361_s5, %s2363_s6  }
  0x28   : > { %s2381_s10 = scalar_select %p1867_p3, 1, 0 }
  0x29   : > { %s1236_s12 = sshll.u32 %s1756_s18, 10  ;;  %s1873_s13 = sshll.u32 %s177_s11, 6 }
  0x2a   : > { %s2382_s0 = sld [smem:[#allocation16_spill]]  ;;  %s181_s25 = scalar_lea.vmem [#allocation2], %s1873_s13 }
  0x2b   : > { %s188_s26 = sshll.u32 %s181_s25, 4  ;;  %p1881_p11 = pnand %p1564_p12, %p39_p13  ;;  %s1885_s26 = int_to_ptr.vmem [resolvable:$true] %s188_s26 }
  0x2c   : > { %s1890_s7 = scalar_lea.hbm %s2357_s1, %s1236_s12  ;;  %s1892_s8 = scalar_lea.sflag [#allocation3], %s177_s11 }
  0x2d   : > { %p1630_p7 = pneg %p1881_p11 }
  0x30   : > { %s1878_s24 = scalar_lea.hbm %s2382_s0, %s1236_s12  ;;  %s1633_s5 = scalar_lea.hbm %s2382_s0, 2048 }
  0x31   : > { %s1628_s14 = scalar_lea.hbm %s1878_s24, 1024  ;;  %p1634_p10 = scmp.lt.s32.totalorder %s1878_s24, %s2382_s0 }
  0x32   : > { %p1629_p5 = scmp.ne.s32.totalorder %s1878_s24, %s1628_s14  ;;  %p1635_p12 = scmp.lt.s32.totalorder %s1633_s5, %s1628_s14 }
  0x34   : > { %p1631_p2 = pnand %p1630_p7, %p1629_p5  ;;  %p1636_p13 = por %p1635_p12, %p1634_p10 }
  0x36   : > { %p1632_p9 = pneg %p1631_p2 }
  0x38   : > { %p1637_p0 = pnand %p1636_p13, %p1632_p9 }
  0x3a   : > { %1640 = shalt.err (!%p1637_p0)
}
  0x3b   : > { %s1641_s11 = scalar_lea.vmem %s1885_s26, 1024  ;;  %s1761_s12 = smov [#allocation2]  }
  0x3c   : > { %p1642_p1 = scmp.ne.s32.totalorder %s1885_s26, %s1641_s11  ;;  %s1646_s29 = sshll.u32 %s1761_s12, 4  ;;  %s1647_s29 = int_to_ptr.vmem [resolvable:$false] %s1646_s29 }
  0x3d   : > { %s1648_s30 = scalar_lea.vmem %s1647_s29, 2048  ;;  %p1649_p6 = scmp.lt.s32.totalorder %s1885_s26, %s1647_s29 }
  0x3e   : > { %p1644_p5 = pnand %p1642_p1, %p1630_p7  ;;  %p1650_p3 = scmp.lt.s32.totalorder %s1648_s30, %s1641_s11 }
  0x40   : > { %p1645_p2 = pneg %p1644_p5  ;;  %p1651_p4 = por %p1650_p3, %p1649_p6 }
  0x42   : > { %p1652_p10 = pnand %p1651_p4, %p1645_p2 }
  0x44   : > { %1655 = shalt.err (!%p1652_p10)
}
  0x45   : > { %s2384_s2 = smov 8   ;;  %s2385_s5 = smov 128  }
  0x46   : > { %1555 = dma.hbm_to_vmem [thread:$0]  (!%p1881_p11), %s1878_s24, 1024, %s1885_s26, %s1892_s8, %s2385_s5, %s2385_s5, %s2384_s2  }
  0x47   : > { %s202_s6 = scalar_lea.vmem [#allocation5], %s1873_s13  ;;  %s198_s20 = sand.u32 1, %s1756_s18  }
  0x48   : > { %s209_s14 = sshll.u32 %s202_s6, 4  ;;  %s199_s25 = scalar_lea.sflag [#allocation6], %s198_s20  ;;  %s1924_s14 = int_to_ptr.vmem [resolvable:$true] %s209_s14 }
  0x49   : > { %s1656_s11 = scalar_lea.hbm %s1890_s7, 1024  ;;  %s1661_s30 = scalar_lea.hbm %s2357_s1, 2048 }
  0x4a   : > { %p1657_p1 = scmp.ne.s32.totalorder %s1890_s7, %s1656_s11  ;;  %p1662_p3 = scmp.lt.s32.totalorder %s1890_s7, %s2357_s1 }
  0x4b   : > { %p1663_p9 = scmp.lt.s32.totalorder %s1661_s30, %s1656_s11 }
  0x4c   : > { %p1659_p4 = pnand %p1657_p1, %p1630_p7 }
  0x4d   : > { %p1664_p12 = por %p1663_p9, %p1662_p3 }
  0x4e   : > { %p1660_p6 = pneg %p1659_p4 }
  0x50   : > { %p1665_p13 = pnand %p1664_p12, %p1660_p6 }
  0x52   : > { %1668 = shalt.err (!%p1665_p13)
}
  0x53   : > { %s1669_s13 = scalar_lea.vmem %s1924_s14, 1024  ;;  %s1762_s24 = smov [#allocation5]  }
  0x54   : > { %p1670_p0 = scmp.ne.s32.totalorder %s1924_s14, %s1669_s13  ;;  %s1674_s26 = sshll.u32 %s1762_s24, 4  ;;  %s1675_s26 = int_to_ptr.vmem [resolvable:$false] %s1674_s26 }
  0x55   : > { %s1676_s8 = scalar_lea.vmem %s1675_s26, 2048  ;;  %p1677_p10 = scmp.lt.s32.totalorder %s1924_s14, %s1675_s26 }
  0x56   : > { %p1672_p5 = pnand %p1670_p0, %p1630_p7  ;;  %p1678_p1 = scmp.lt.s32.totalorder %s1676_s8, %s1669_s13 }
  0x58   : > { %p1673_p2 = pneg %p1672_p5  ;;  %p1679_p4 = por %p1678_p1, %p1677_p10 }
  0x5a   : > { %p1680_p3 = pnand %p1679_p4, %p1673_p2 }
  0x5c   : > { %1683 = shalt.err (!%p1680_p3)
}
  0x5d   : > { %1558 = dma.hbm_to_vmem [thread:$0]  (!%p1881_p11), %s1890_s7, 1024, %s1924_s14, %s199_s25, %s2385_s5, %s2385_s5, %s2384_s2  }
  0x5e   : > { %221 = sbr.rel (%p1829_p8) target bundleno = 1459 (0x5b3), region = 36 }
  0x63   : > { %s1954_s0 = sand.u32 1, %s1748_s16   ;;  %p2386_p7 = scmp.ne.s32.totalorder %s2374_s21, 0 }
  0x64   : > { %s1203_s9 = sshll.u32 %s1954_s0, 6  ;;  %s224_s6 = scalar_lea.sflag [#allocation3], %s1954_s0 }
  0x65   : > { %s1958_s20 = scalar_lea.vmem [#allocation2], %s1203_s9 }
  0x66   : > { %1727 = dma.done.wait (%p2386_p7), %s224_s6, 1024  }
  0x67   : > { %1729 = vsyncadd (%p2386_p7), %s224_s6, 4294966272  ;;  %s232_s28 = sand.u32 1, %s1810_s19   ;;  %s1965_s7 = scalar_lea.vmem [#allocation5], %s1203_s9 }
  0x68   : > { %s233_s23 = scalar_lea.sflag [#allocation6], %s232_s28 }
  0x69   : > { %1731 = dma.done.wait (%p2386_p7), %s233_s23, 1024  }
  0x6a   : > { %1733 = vsyncadd (%p2386_p7), %s233_s23, 4294966272  ;;  %p2387_p8 = scmp.eq.s32.totalorder %s1810_s19, 0 }
  0x6c   : > { %1735 = dma.done.wait (%p2387_p8), [#allocation6], 4096   ;;  %p2388_p11 = pmov %p2387_p8 }
  0x6d   : > { %v1976_v0 = vld [vmem:[%s1958_s20 + $0x38] sm:$0xff]  ;;  %v1979_v1 = vld [vmem:[%s1958_s20 + $0x30] sm:$0xff]  ;;  %vm319_vm0 = vcmask 523264   ;;  %v1984_v2 = vld [vmem:[%s1958_s20 + $0x28] sm:$0xff]  ;;  %s1206_s5 = sshll.u32 %s1954_s0, 3  ;;  %vm1060_vm1 = vcmask 1041409  }
  0x6e   : > { %1737 = vsyncadd (%p2388_p11), [#allocation6], 4294963200  ;;  %1454 = vmatprep.subr.mxu1 %v1976_v0  ;;  %v1987_v3 = vld [vmem:[%s1965_s7] sm:$0xff]  ;;  %v2001_v5 = vld [vmem:[%s1958_s20 + $0x18] sm:$0xff]  ;;  %vm1062_vm2 = vcmask 1042434   ;;  %vm1064_vm3 = vcmask 1043459  }
  0x6f   : > { %1455 = vmatpush3.msra.mxu1 %v1976_v0  ;;  %1470 = vmatprep.mubr.msk.f32.mxu1 %vm319_vm0, %v1987_v3  ;;  %v1994_v4 = vld [vmem:[%s1958_s20 + $0x20] sm:$0xff]  ;;  %v2006_v6 = vld [vmem:[%s1958_s20 + $0x10] sm:$0xff]  ;;  %v2011_v7 = vld [vmem:[%s1958_s20 + $0x8] sm:$0xff]  ;;  %vm1066_vm4 = vcmask 1044484   ;;  %vm1068_vm5 = vcmask 1045509   ;;  %vm1070_vm6 = vcmask 1046534  }
  0x70   : > { %1456 = vmatprep.subr.mxu1 %v1979_v1  ;;  %1498 = vmatprep.mubr.msk.f32.mxu0 %vm319_vm0, %v1987_v3  ;;  %v2016_v8 = vld [vmem:[%s1958_s20] sm:$0xff]  ;;  %v2021_v9 = vld [vmem:[%s1965_s7 + $0x8] sm:$0xff]  ;;  %v2023_v10 = vld [vmem:[#allocation7 + $0xf8] sm:$0xff]  ;;  %s1233_s14 = sshll.u32 %s1810_s19, 7  ;;  %s269_s25 = scalar_lea.vmem [#allocation8], %s1206_s5  ;;  %vm1072_vm7 = vcmask 1047559  }
  0x71   : > { %1457 = vmatpush3.msra.mxu1 %v1979_v1  ;;  %v2027_v11 = vld [vmem:[%s1965_s7 + $0x10] sm:$0xff]  ;;  %v2029_v12 = vld [vmem:[#allocation7 + $0x78] sm:$0xff]  ;;  %v2045_v16 = vld [vmem:[#allocation7 + $0xe8] sm:$0xff]  ;;  %s1090_s11 = sshll.u32 %s269_s25, 4  ;;  %s2319_s30 = scalar_lea.hbm %s2360_s4, %s1233_s14  ;;  %s1091_s11 = int_to_ptr.vmem [resolvable:$true] %s1090_s11 }
  0x72   : > { %1458 = vmatprep.subr.mxu1 %v1984_v2  ;;  %v2032_v13 = vld [vmem:[#allocation7 + $0xf0] sm:$0xff]  ;;  %v2042_v15 = vld [vmem:[%s1965_s7 + $0x18] sm:$0xff]  ;;  %v2048_v17 = vld [vmem:[%s1965_s7 + $0x20] sm:$0xff]  ;;  %s1077_s13 = scalar_lea.sflag [#allocation4], %s1954_s0  ;;  %s1684_s24 = scalar_lea.vmem %s1091_s11, 128 }
  0x73   : > { %1459 = vmatpush3.msra.mxu1 %v1984_v2  ;;  %v2037_v14 = vld [vmem:[#allocation7 + $0x70] sm:$0xff]  ;;  %v2051_v18 = vld [vmem:[#allocation7 + $0x68] sm:$0xff]  ;;  %v2054_v19 = vld [vmem:[#allocation7 + $0xe0] sm:$0xff]  ;;  %p1685_p6 = scmp.ne.s32.totalorder %s1091_s11, %s1684_s24  ;;  %p2393_p9 = scmp.ne.s32.totalorder %s2381_s10, 0 }
  0x74   : > { %1460 = vmatprep.subr.mxu1 %v1994_v4  ;;  %v2059_v20 = vld [vmem:[#allocation7 + $0x60] sm:$0xff]  ;;  %v2064_v21 = vld [vmem:[%s1965_s7 + $0x28] sm:$0xff]  ;;  %v2067_v22 = vld [vmem:[#allocation7 + $0xd8] sm:$0xff]  ;;  %s1763_s19 = smov [#allocation8]  }
  0x75   : > { %1461 = vmatpush3.msra.mxu1 %v1994_v4  ;;  %v2070_v23 = vld [vmem:[%s1965_s7 + $0x30] sm:$0xff]  ;;  %v2073_v24 = vld [vmem:[#allocation7 + $0x58] sm:$0xff]  ;;  %v2089_v28 = vld [vmem:[#allocation7 + $0xc8] sm:$0xff]  ;;  %p1686_p12 = pnand %p1685_p6, %p2393_p9  ;;  %s1688_s26 = sshll.u32 %s1763_s19, 4  ;;  %s1689_s26 = int_to_ptr.vmem [resolvable:$false] %s1688_s26 }
  0x76   : > { %1462 = vmatprep.subr.mxu1 %v2001_v5  ;;  %v2076_v25 = vld [vmem:[#allocation7 + $0xd0] sm:$0xff]  ;;  %v2086_v27 = vld [vmem:[%s1965_s7 + $0x38] sm:$0xff]  ;;  %v2092_v29 = vld [vmem:[#allocation7 + $0x48] sm:$0xff]  ;;  %s1690_s8 = scalar_lea.vmem %s1689_s26, 256  ;;  %p1691_p0 = scmp.lt.s32.totalorder %s1091_s11, %s1689_s26 }
  0x77   : > { %1463 = vmatpush3.msra.mxu1 %v2001_v5  ;;  %v2081_v26 = vld [vmem:[#allocation7 + $0x50] sm:$0xff]  ;;  %v2095_v30 = vld [vmem:[#allocation7 + $0xc0] sm:$0xff]  ;;  %v2103_v32 = vld [vmem:[#allocation7 + $0xb8] sm:$0xff]  ;;  %p1687_p13 = pneg %p1686_p12  ;;  %p1692_p5 = scmp.lt.s32.totalorder %s1690_s8, %s1684_s24 }
  0x78   : > { %1464 = vmatprep.subr.mxu1 %v2006_v6  ;;  %v2100_v31 = vld [vmem:[#allocation7 + $0x40] sm:$0xff]  ;;  %v2106_v33 = vld [vmem:[#allocation7 + $0x38] sm:$0xff]  ;;  %v2109_v34 = vld [vmem:[#allocation7 + $0xb0] sm:$0xff] }
  0x79   : > { %1465 = vmatpush3.msra.mxu1 %v2006_v6  ;;  %v2112_v35 = vld [vmem:[#allocation7 + $0x30] sm:$0xff]  ;;  %v2115_v36 = vld [vmem:[#allocation7 + $0xa8] sm:$0xff]  ;;  %v2121_v38 = vld [vmem:[#allocation7 + $0xa0] sm:$0xff]  ;;  %p1693_p2 = por %p1692_p5, %p1691_p0 }
  0x7a   : > { %1466 = vmatprep.subr.mxu1 %v2011_v7  ;;  %v2118_v37 = vld [vmem:[#allocation7 + $0x28] sm:$0xff]  ;;  %v2124_v39 = vld [vmem:[#allocation7 + $0x20] sm:$0xff]  ;;  %v2127_v40 = vld [vmem:[#allocation7 + $0x98] sm:$0xff] }
  0x7b   : > { %1467 = vmatpush3.msra.mxu1 %v2011_v7  ;;  %v2130_v41 = vld [vmem:[#allocation7 + $0x18] sm:$0xff]  ;;  %v2133_v42 = vld [vmem:[#allocation7 + $0x90] sm:$0xff]  ;;  %v2141_v44 = vld [vmem:[#allocation7 + $0x88] sm:$0xff]  ;;  %p1694_p10 = pnand %p1693_p2, %p1687_p13 }
  0x7c   : > { %1468 = vmatprep.subr.mxu1 %v2016_v8  ;;  %v2136_v43 = vld [vmem:[#allocation7 + $0x10] sm:$0xff]  ;;  %v2144_v45 = vld [vmem:[#allocation7 + $0x8] sm:$0xff]  ;;  %v2147_v46 = vld [vmem:[#allocation7 + $0x80] sm:$0xff] }
  0x7d   : > { %1469 = vmatpush3.msra.mxu1 %v2016_v8  ;;  %2389 = vst [vmem:[#allocation14_spill] sm:$0xff] %v2147_v46  ;;  %v2150_v47 = vld [vmem:[#allocation7] sm:$0xff] }
  0x7e   : > { %1471 = vmatmul.mubr.msk.f32.vlgmr.msra.gmra.mxu1 %vm319_vm0, %v2021_v9  ;;  %1254 = vmatprep.subr.mxu1 %v2023_v10  ;;  %2390 = vst [vmem:[#allocation15_spill] sm:$0xff] %v2150_v47 }
  0x7f   : > { %1473 = vmatprep.mubr.msk.f32.mxu1 %vm319_vm0, %v2027_v11  ;;  %1255 = vmatpush3.msra.mxu1 %v2029_v12 }
  0x80   : > { %1256 = vmatprep.subr.mxu1 %v2032_v13 }
  0x81   : > { %1257 = vmatpush3.msra.mxu1 %v2037_v14 }
  0x82   : > { %1474 = vmatmul.mubr.msk.f32.gmra.mxu1 %vm319_vm0, %v2042_v15  ;;  %1258 = vmatprep.subr.mxu1 %v2045_v16 }
  0x83   : > { %1476 = vmatprep.mubr.msk.f32.mxu1 %vm319_vm0, %v2048_v17  ;;  %1259 = vmatpush3.msra.mxu1 %v2051_v18 }
  0x84   : > { %1260 = vmatprep.subr.mxu1 %v2054_v19 }
  0x85   : > { %1261 = vmatpush3.msra.mxu1 %v2059_v20 }
  0x86   : > { %1477 = vmatmul.mubr.msk.f32.gmra.mxu1 %vm319_vm0, %v2064_v21  ;;  %1262 = vmatprep.subr.mxu1 %v2067_v22 }
  0x87   : > { %1479 = vmatprep.mubr.msk.f32.mxu1 %vm319_vm0, %v2070_v23  ;;  %1263 = vmatpush3.msra.mxu1 %v2073_v24 }
  0x88   : > { %1264 = vmatprep.subr.mxu1 %v2076_v25 }
  0x89   : > { %1265 = vmatpush3.msra.mxu1 %v2081_v26 }
  0x8a   : > { %1480 = vmatmul.mubr.msk.f32.gmra.mxu1 %vm319_vm0, %v2086_v27  ;;  %1266 = vmatprep.subr.mxu1 %v2089_v28 }
  0x8b   : > { %1267 = vmatpush3.msra.mxu1 %v2092_v29 }
  0x8c   : > { %1268 = vmatprep.subr.mxu1 %v2095_v30 }
  0x8d   : > { %1269 = vmatpush3.msra.mxu1 %v2100_v31 }
  0x8e   : > { %1270 = vmatprep.subr.mxu1 %v2103_v32 }
  0x8f   : > { %1271 = vmatpush3.msra.mxu1 %v2106_v33 }
  0x90   : > { %1272 = vmatprep.subr.mxu1 %v2109_v34 }
  0x91   : > { %1273 = vmatpush3.msra.mxu1 %v2112_v35 }
  0x92   : > { %1274 = vmatprep.subr.mxu1 %v2115_v36 }
  0x93   : > { %1275 = vmatpush3.msra.mxu1 %v2118_v37 }
  0x94   : > { %1276 = vmatprep.subr.mxu1 %v2121_v38 }
  0x95   : > { %1277 = vmatpush3.msra.mxu1 %v2124_v39 }
  0x96   : > { %1278 = vmatprep.subr.mxu1 %v2127_v40 }
  0x97   : > { %1279 = vmatpush3.msra.mxu1 %v2130_v41 }
  0x98   : > { %1280 = vmatprep.subr.mxu1 %v2133_v42 }
  0x99   : > { %1281 = vmatpush3.msra.mxu1 %v2136_v43 }
  0x9a   : > { %1282 = vmatprep.subr.mxu1 %v2141_v44 }
  0x9b   : > { %1283 = vmatpush3.msra.mxu1 %v2144_v45 }
  0x9c   : > { %1284 = vmatprep.subr.mxu1 %v2147_v46 }
  0x9d   : > { %1285 = vmatpush3.msra.mxu1 %v2150_v47 }
 0x13e   : > { %v1472_v48 = vpop.f32.mrf.mxu1 }
 0x140   : > { %v410_v49 = vpop.f32.mrf.mxu1 }
 0x141   : > { %519 = vmatprep.mubr.f32.mxu1 %v410_v49 }
 0x142   : > { %520 = vmatmul.mubr.f32.vlgmr.msra.gmra.mxu1 %v2016_v8  ;;  %v1475_v50 = vpop.f32.mrf.mxu1 }
 0x143   : > { %524 = vmatprep.mubr.f32.mxu1 %v1472_v48 }
 0x144   : > { %v420_v51 = vpop.f32.mrf.mxu1 }
 0x146   : > { %525 = vmatmul.mubr.f32.gmra.mxu1 %v2011_v7  ;;  %v1478_v52 = vpop.f32.mrf.mxu1 }
 0x147   : > { %529 = vmatprep.mubr.f32.mxu1 %v420_v51 }
 0x148   : > { %v430_v53 = vpop.f32.mrf.mxu1 }
 0x14a   : > { %530 = vmatmul.mubr.f32.gmra.mxu1 %v2006_v6  ;;  %v1481_v54 = vpop.f32.mrf.mxu1 }
 0x14b   : > { %534 = vmatprep.mubr.f32.mxu1 %v1475_v50 }
 0x14c   : > { %v440_v55 = vpop.f32.mrf.mxu1 }
 0x14e   : > { %535 = vmatmul.mubr.f32.gmra.mxu1 %v2001_v5 }
 0x14f   : > { %539 = vmatprep.mubr.f32.mxu1 %v430_v53 }
 0x152   : > { %540 = vmatmul.mubr.f32.gmra.mxu1 %v1994_v4 }
 0x153   : > { %544 = vmatprep.mubr.f32.mxu1 %v1478_v52 }
 0x156   : > { %545 = vmatmul.mubr.f32.gmra.mxu1 %v1984_v2 }
 0x157   : > { %549 = vmatprep.mubr.f32.mxu1 %v440_v55 }
 0x15a   : > { %550 = vmatmul.mubr.f32.gmra.mxu1 %v1979_v1 }
 0x15b   : > { %554 = vmatprep.mubr.f32.mxu1 %v1481_v54 }
 0x15e   : > { %555 = vmatmul.mubr.f32.gmra.mxu1 %v1976_v0 }
 0x15f   : > { %1526 = vmatprep.mubr.msk.f32.mxu1 %vm319_vm0, %v1987_v3  ;;  %v2166_v3 = vld [vmem:[%s2359_s3] ss:$0 sm:$0xff] }
 0x202   : > { %v1286_v56 = vpop.f32.mrf.mxu1 }
 0x204   : > { %v1287_v57 = vpop.f32.mrf.mxu1 }
 0x206   : > { %v1289_v58 = vpop.f32.mrf.mxu1 }
 0x208   : > { %v1290_v59 = vpop.f32.mrf.mxu1 }
 0x20a   : > { %v1292_v60 = vpop.f32.mrf.mxu1 }
 0x20c   : > { %v1293_v61 = vpop.f32.mrf.mxu1 }
 0x20d   : > { %v1294_v46 = vadd.f32 %v1293_v61, %v1292_v60 }
 0x20e   : > { %v1295_v62 = vpop.f32.mrf.mxu1 }
 0x20f   : > { %v532_v60 = vadd.f32 %v1294_v46, %v2166_v3 }
 0x210   : > { %v1296_v63 = vpop.f32.mrf.mxu1 }
 0x211   : > { %v1297_v54 = vadd.f32 %v1296_v63, %v1295_v62  ;;  %v1288_v62 = vadd.f32 %v1287_v57, %v1286_v56  ;;  %v2391_v57 = vld [vmem:[#allocation14_spill] sm:$0xff] }
 0x212   : > { %v1298_v4 = vpop.f32.mrf.mxu1 }
 0x214   : > { %v1299_v5 = vpop.f32.mrf.mxu1 }
 0x215   : > { %v1300_v51 = vadd.f32 %v1299_v5, %v1298_v4  ;;  %v537_v4 = vadd.f32 %v1297_v54, %v2166_v3 }
 0x216   : > { %v1301_v2 = vpop.f32.mrf.mxu1 }
 0x218   : > { %v1302_v6 = vpop.f32.mrf.mxu1 }
 0x219   : > { %v1303_v49 = vadd.f32 %v1302_v6, %v1301_v2  ;;  %v1291_v6 = vadd.f32 %v1290_v59, %v1289_v58  ;;  %v2189_v58 = vmax.f32 %v537_v4, 0.0  ;;  %v522_v59 = vadd.f32 %v1288_v62, %v2166_v3 }
 0x21a   : > { %v1304_v7 = vpop.f32.mrf.mxu1 }
 0x21b   : > { %v547_v55 = vadd.f32 %v1303_v49, %v2166_v3  ;;  %v527_v63 = vadd.f32 %v1291_v6, %v2166_v3  ;;  %v560_v56 = vmax.f32 %v522_v59, 0.0 }
 0x21c   : > { %v1305_v1 = vpop.f32.mrf.mxu1 }
 0x21d   : > { %v1306_v48 = vadd.f32 %v1305_v1, %v1304_v7  ;;  %v542_v7 = vadd.f32 %v1300_v51, %v2166_v3  ;;  %v2179_v5 = vmax.f32 %v547_v55, 0.0  ;;  %v2194_v1 = vmax.f32 %v532_v60, 0.0 }
 0x21e   : > { %v1307_v8 = vpop.f32.mrf.mxu1  ;;  %v561_v46 = vmax.f32 %v527_v63, 0.0 }
 0x21f   : > { %v552_v52 = vadd.f32 %v1306_v48, %v2166_v3  ;;  %v2184_v61 = vmax.f32 %v542_v7, 0.0 }
 0x220   : > { %v1308_v0 = vpop.f32.mrf.mxu1 }
 0x221   : > { %v1309_v50 = vadd.f32 %v1308_v0, %v1307_v8  ;;  %v2174_v2 = vmax.f32 %v552_v52, 0.0  ;;  %v2392_v8 = vld [vmem:[#allocation15_spill] sm:$0xff] }
 0x223   : > { %v557_v53 = vadd.f32 %v1309_v50, %v2166_v3 }
 0x225   : > { %v2171_v47 = vmax.f32 %v557_v53, 0.0 }
 0x227   : > { %1482 = vmatprep.subr.mxu0 %v2171_v47 }
 0x228   : > { %1483 = vmatpush3.msra.mxu0 %v2171_v47 }
 0x229   : > { %1484 = vmatprep.subr.mxu0 %v2174_v2 }
 0x22a   : > { %1485 = vmatpush3.msra.mxu0 %v2174_v2 }
 0x22b   : > { %1486 = vmatprep.subr.mxu0 %v2179_v5 }
 0x22c   : > { %1487 = vmatpush3.msra.mxu0 %v2179_v5 }
 0x22d   : > { %1488 = vmatprep.subr.mxu0 %v2184_v61 }
 0x22e   : > { %1489 = vmatpush3.msra.mxu0 %v2184_v61 }
 0x22f   : > { %1490 = vmatprep.subr.mxu0 %v2189_v58 }
 0x230   : > { %1491 = vmatpush3.msra.mxu0 %v2189_v58 }
 0x231   : > { %1492 = vmatprep.subr.mxu0 %v2194_v1 }
 0x232   : > { %1493 = vmatpush3.msra.mxu0 %v2194_v1 }
 0x233   : > { %1494 = vmatprep.subr.mxu0 %v561_v46 }
 0x234   : > { %1495 = vmatpush3.msra.mxu0 %v561_v46 }
 0x235   : > { %1496 = vmatprep.subr.mxu0 %v560_v56 }
 0x236   : > { %1497 = vmatpush3.msra.mxu0 %v560_v56 }
 0x237   : > { %1499 = vmatmul.mubr.msk.f32.vlgmr.msra.gmra.mxu0 %vm319_vm0, %v2021_v9  ;;  %1326 = vmatprep.subr.mxu0 %v2023_v10 }
 0x238   : > { %1501 = vmatprep.mubr.msk.f32.mxu0 %vm319_vm0, %v2027_v11  ;;  %1327 = vmatpush3.msra.mxu0 %v2029_v12 }
 0x239   : > { %1328 = vmatprep.subr.mxu0 %v2032_v13 }
 0x23a   : > { %1329 = vmatpush3.msra.mxu0 %v2037_v14 }
 0x23b   : > { %1502 = vmatmul.mubr.msk.f32.gmra.mxu0 %vm319_vm0, %v2042_v15  ;;  %1330 = vmatprep.subr.mxu0 %v2045_v16 }
 0x23c   : > { %1504 = vmatprep.mubr.msk.f32.mxu0 %vm319_vm0, %v2048_v17  ;;  %1331 = vmatpush3.msra.mxu0 %v2051_v18 }
 0x23d   : > { %1332 = vmatprep.subr.mxu0 %v2054_v19 }
 0x23e   : > { %1333 = vmatpush3.msra.mxu0 %v2059_v20 }
 0x23f   : > { %1505 = vmatmul.mubr.msk.f32.gmra.mxu0 %vm319_vm0, %v2064_v21  ;;  %1334 = vmatprep.subr.mxu0 %v2067_v22 }
 0x240   : > { %1507 = vmatprep.mubr.msk.f32.mxu0 %vm319_vm0, %v2070_v23  ;;  %1335 = vmatpush3.msra.mxu0 %v2073_v24 }
 0x241   : > { %1336 = vmatprep.subr.mxu0 %v2076_v25 }
 0x242   : > { %1337 = vmatpush3.msra.mxu0 %v2081_v26 }
 0x243   : > { %1508 = vmatmul.mubr.msk.f32.gmra.mxu0 %vm319_vm0, %v2086_v27  ;;  %1338 = vmatprep.subr.mxu0 %v2089_v28 }
 0x244   : > { %1339 = vmatpush3.msra.mxu0 %v2092_v29 }
 0x245   : > { %1340 = vmatprep.subr.mxu0 %v2095_v30 }
 0x246   : > { %1341 = vmatpush3.msra.mxu0 %v2100_v31 }
 0x247   : > { %1342 = vmatprep.subr.mxu0 %v2103_v32 }
 0x248   : > { %1343 = vmatpush3.msra.mxu0 %v2106_v33 }
 0x249   : > { %1344 = vmatprep.subr.mxu0 %v2109_v34 }
 0x24a   : > { %1345 = vmatpush3.msra.mxu0 %v2112_v35 }
 0x24b   : > { %1346 = vmatprep.subr.mxu0 %v2115_v36 }
 0x24c   : > { %1347 = vmatpush3.msra.mxu0 %v2118_v37 }
 0x24d   : > { %1348 = vmatprep.subr.mxu0 %v2121_v38 }
 0x24e   : > { %1349 = vmatpush3.msra.mxu0 %v2124_v39 }
 0x24f   : > { %1350 = vmatprep.subr.mxu0 %v2127_v40 }
 0x250   : > { %1351 = vmatpush3.msra.mxu0 %v2130_v41 }
 0x251   : > { %1352 = vmatprep.subr.mxu0 %v2133_v42 }
 0x252   : > { %1353 = vmatpush3.msra.mxu0 %v2136_v43 }
 0x253   : > { %1354 = vmatprep.subr.mxu0 %v2141_v44 }
 0x254   : > { %1355 = vmatpush3.msra.mxu0 %v2144_v45 }
 0x255   : > { %1356 = vmatprep.subr.mxu0 %v2391_v57 }
 0x256   : > { %1357 = vmatpush3.msra.mxu0 %v2392_v8 }
 0x257   : > { %1398 = vmatprep.subr.mxu0 %v2023_v10 }
 0x2f7   : > { %v1500_v48 = vpop.f32.mrf.mxu0 }
 0x2f9   : > { %v634_v0 = vpop.f32.mrf.mxu0 }
 0x2fa   : > { %737 = vmatprep.mubr.f32.mxu0 %v634_v0 }
 0x2fb   : > { %738 = vmatmul.mubr.f32.vlgmr.msra.gmra.mxu0 %v560_v56  ;;  %v1503_v49 = vpop.f32.mrf.mxu0 }
 0x2fc   : > { %742 = vmatprep.mubr.f32.mxu0 %v1500_v48  ;;  %1399 = vmatpush3.msra.mxu0 %v2029_v12 }
 0x2fd   : > { %v644_v50 = vpop.f32.mrf.mxu0  ;;  %1400 = vmatprep.subr.mxu0 %v2032_v13 }
 0x2fe   : > { %1401 = vmatpush3.msra.mxu0 %v2037_v14 }
 0x2ff   : > { %743 = vmatmul.mubr.f32.gmra.mxu0 %v561_v46  ;;  %1402 = vmatprep.subr.mxu0 %v2045_v16  ;;  %v1506_v10 = vpop.f32.mrf.mxu0 }
 0x300   : > { %747 = vmatprep.mubr.f32.mxu0 %v644_v50  ;;  %1403 = vmatpush3.msra.mxu0 %v2051_v18 }
 0x301   : > { %1404 = vmatprep.subr.mxu0 %v2054_v19  ;;  %v654_v12 = vpop.f32.mrf.mxu0 }
 0x302   : > { %1405 = vmatpush3.msra.mxu0 %v2059_v20 }
 0x303   : > { %748 = vmatmul.mubr.f32.gmra.mxu0 %v2194_v1  ;;  %1406 = vmatprep.subr.mxu0 %v2067_v22  ;;  %v1509_v13 = vpop.f32.mrf.mxu0 }
 0x304   : > { %752 = vmatprep.mubr.f32.mxu0 %v1503_v49  ;;  %1407 = vmatpush3.msra.mxu0 %v2073_v24 }
 0x305   : > { %1408 = vmatprep.subr.mxu0 %v2076_v25  ;;  %v664_v14 = vpop.f32.mrf.mxu0 }
 0x306   : > { %1409 = vmatpush3.msra.mxu0 %v2081_v26 }
 0x307   : > { %753 = vmatmul.mubr.f32.gmra.mxu0 %v2189_v58  ;;  %1410 = vmatprep.subr.mxu0 %v2089_v28 }
 0x308   : > { %757 = vmatprep.mubr.f32.mxu0 %v654_v12  ;;  %1411 = vmatpush3.msra.mxu0 %v2092_v29 }
 0x309   : > { %1412 = vmatprep.subr.mxu0 %v2095_v30 }
 0x30a   : > { %1413 = vmatpush3.msra.mxu0 %v2100_v31 }
 0x30b   : > { %758 = vmatmul.mubr.f32.gmra.mxu0 %v2184_v61  ;;  %1414 = vmatprep.subr.mxu0 %v2103_v32 }
 0x30c   : > { %762 = vmatprep.mubr.f32.mxu0 %v1506_v10  ;;  %1415 = vmatpush3.msra.mxu0 %v2106_v33 }
 0x30d   : > { %1416 = vmatprep.subr.mxu0 %v2109_v34 }
 0x30e   : > { %1417 = vmatpush3.msra.mxu0 %v2112_v35 }
 0x30f   : > { %763 = vmatmul.mubr.f32.gmra.mxu0 %v2179_v5  ;;  %1418 = vmatprep.subr.mxu0 %v2115_v36 }
 0x310   : > { %767 = vmatprep.mubr.f32.mxu0 %v664_v14  ;;  %1419 = vmatpush3.msra.mxu0 %v2118_v37 }
 0x311   : > { %1420 = vmatprep.subr.mxu0 %v2121_v38 }
 0x312   : > { %1421 = vmatpush3.msra.mxu0 %v2124_v39 }
 0x313   : > { %768 = vmatmul.mubr.f32.gmra.mxu0 %v2174_v2  ;;  %1422 = vmatprep.subr.mxu0 %v2127_v40 }
 0x314   : > { %772 = vmatprep.mubr.f32.mxu0 %v1509_v13  ;;  %1423 = vmatpush3.msra.mxu0 %v2130_v41 }
 0x315   : > { %1424 = vmatprep.subr.mxu0 %v2133_v42 }
 0x316   : > { %1425 = vmatpush3.msra.mxu0 %v2136_v43 }
 0x317   : > { %773 = vmatmul.mubr.f32.gmra.mxu0 %v2171_v47  ;;  %1426 = vmatprep.subr.mxu0 %v2141_v44 }
 0x318   : > { %1427 = vmatpush3.msra.mxu0 %v2144_v45 }
 0x319   : > { %1428 = vmatprep.subr.mxu0 %v2391_v57 }
 0x31a   : > { %1429 = vmatpush3.msra.mxu0 %v2392_v8 }
 0x3bb   : > { %v1358_v16 = vpop.f32.mrf.mxu0 }
 0x3bd   : > { %v1359_v18 = vpop.f32.mrf.mxu0 }
 0x3be   : > { %v1360_v55 = vadd.f32 %v1359_v18, %v1358_v16 }
 0x3bf   : > { %v1361_v19 = vpop.f32.mrf.mxu0 }
 0x3c0   : > { %v740_v5 = vadd.f32 %v1360_v55, %v2166_v3 }
 0x3c1   : > { %v1362_v20 = vpop.f32.mrf.mxu0 }
 0x3c2   : > { %v1363_v52 = vadd.f32 %v1362_v20, %v1361_v19  ;;  %v778_v61 = vmax.f32 %v740_v5, 0.0 }
 0x3c3   : > { %v1364_v22 = vpop.f32.mrf.mxu0 }
 0x3c4   : > { %v745_v6 = vadd.f32 %v1363_v52, %v2166_v3 }
 0x3c5   : > { %v1365_v24 = vpop.f32.mrf.mxu0 }
 0x3c6   : > { %v1366_v45 = vadd.f32 %v1365_v24, %v1364_v22  ;;  %v779_v60 = vmax.f32 %v745_v6, 0.0 }
 0x3c7   : > { %v1367_v25 = vpop.f32.mrf.mxu0 }
 0x3c8   : > { %v750_v7 = vadd.f32 %v1366_v45, %v2166_v3 }
 0x3c9   : > { %v1368_v26 = vpop.f32.mrf.mxu0 }
 0x3ca   : > { %v1369_v42 = vadd.f32 %v1368_v26, %v1367_v25  ;;  %v780_v62 = vmax.f32 %v750_v7, 0.0 }
 0x3cb   : > { %v1370_v28 = vpop.f32.mrf.mxu0 }
 0x3cc   : > { %v755_v53 = vadd.f32 %v1369_v42, %v2166_v3 }
 0x3cd   : > { %v1371_v29 = vpop.f32.mrf.mxu0 }
 0x3ce   : > { %v1372_v39 = vadd.f32 %v1371_v29, %v1370_v28  ;;  %v781_v4 = vmax.f32 %v755_v53, 0.0 }
 0x3cf   : > { %v1373_v30 = vpop.f32.mrf.mxu0 }
 0x3d0   : > { %v760_v47 = vadd.f32 %v1372_v39, %v2166_v3 }
 0x3d1   : > { %v1374_v31 = vpop.f32.mrf.mxu0 }
 0x3d2   : > { %v1375_v37 = vadd.f32 %v1374_v31, %v1373_v30  ;;  %v782_v2 = vmax.f32 %v760_v47, 0.0 }
 0x3d3   : > { %v1376_v32 = vpop.f32.mrf.mxu0 }
 0x3d4   : > { %v765_v43 = vadd.f32 %v1375_v37, %v2166_v3 }
 0x3d5   : > { %v1377_v33 = vpop.f32.mrf.mxu0 }
 0x3d6   : > { %v1378_v35 = vadd.f32 %v1377_v33, %v1376_v32  ;;  %v783_v54 = vmax.f32 %v765_v43, 0.0 }
 0x3d7   : > { %v1379_v34 = vpop.f32.mrf.mxu0 }
 0x3d8   : > { %v770_v40 = vadd.f32 %v1378_v35, %v2166_v3 }
 0x3d9   : > { %v1380_v36 = vpop.f32.mrf.mxu0 }
 0x3da   : > { %v1381_v38 = vadd.f32 %v1380_v36, %v1379_v34  ;;  %v784_v51 = vmax.f32 %v770_v40, 0.0 }
 0x3dc   : > { %v775_v41 = vadd.f32 %v1381_v38, %v2166_v3 }
 0x3de   : > { %v785_v44 = vmax.f32 %v775_v41, 0.0 }
 0x3e0   : > { %1510 = vmatprep.subr.mxu1 %v785_v44 }
 0x3e1   : > { %1511 = vmatpush3.msra.mxu1 %v785_v44 }
 0x3e2   : > { %1512 = vmatprep.subr.mxu1 %v784_v51 }
 0x3e3   : > { %1513 = vmatpush3.msra.mxu1 %v784_v51 }
 0x3e4   : > { %1514 = vmatprep.subr.mxu1 %v783_v54 }
 0x3e5   : > { %1515 = vmatpush3.msra.mxu1 %v783_v54 }
 0x3e6   : > { %1516 = vmatprep.subr.mxu1 %v782_v2 }
 0x3e7   : > { %1517 = vmatpush3.msra.mxu1 %v782_v2 }
 0x3e8   : > { %1518 = vmatprep.subr.mxu1 %v781_v4 }
 0x3e9   : > { %1519 = vmatpush3.msra.mxu1 %v781_v4 }
 0x3ea   : > { %1520 = vmatprep.subr.mxu1 %v780_v62 }
 0x3eb   : > { %1521 = vmatpush3.msra.mxu1 %v780_v62 }
 0x3ec   : > { %1522 = vmatprep.subr.mxu1 %v779_v60 }
 0x3ed   : > { %1523 = vmatpush3.msra.mxu1 %v779_v60 }
 0x3ee   : > { %1524 = vmatprep.subr.mxu1 %v778_v61 }
 0x3ef   : > { %1525 = vmatpush3.msra.mxu1 %v778_v61 }
 0x3f0   : > { %1527 = vmatmul.mubr.msk.f32.vlgmr.msra.gmra.mxu1 %vm319_vm0, %v2021_v9 }
 0x3f1   : > { %1529 = vmatprep.mubr.msk.f32.mxu1 %vm319_vm0, %v2027_v11 }
 0x3f4   : > { %1530 = vmatmul.mubr.msk.f32.gmra.mxu1 %vm319_vm0, %v2042_v15 }
 0x3f5   : > { %1532 = vmatprep.mubr.msk.f32.mxu1 %vm319_vm0, %v2048_v17 }
 0x3f8   : > { %1533 = vmatmul.mubr.msk.f32.gmra.mxu1 %vm319_vm0, %v2064_v21 }
 0x3f9   : > { %1535 = vmatprep.mubr.msk.f32.mxu1 %vm319_vm0, %v2070_v23 }
 0x3fc   : > { %1536 = vmatmul.mubr.msk.f32.gmra.mxu1 %vm319_vm0, %v2086_v27 }
 0x4b0   : > { %v1528_v63 = vpop.f32.mrf.mxu1 }
 0x4b2   : > { %v852_v9 = vpop.f32.mrf.mxu1 }
 0x4b3   : > { %955 = vmatprep.mubr.f32.mxu0 %v852_v9 }
 0x4b4   : > { %956 = vmatmul.mubr.f32.vlgmr.msra.gmra.mxu0 %v778_v61  ;;  %v1531_v11 = vpop.f32.mrf.mxu1 }
 0x4b5   : > { %960 = vmatprep.mubr.f32.mxu0 %v1528_v63 }
 0x4b6   : > { %v862_v58 = vpop.f32.mrf.mxu1 }
 0x4b8   : > { %961 = vmatmul.mubr.f32.gmra.mxu0 %v779_v60  ;;  %v1534_v15 = vpop.f32.mrf.mxu1 }
 0x4b9   : > { %965 = vmatprep.mubr.f32.mxu0 %v862_v58 }
 0x4ba   : > { %v872_v17 = vpop.f32.mrf.mxu1 }
 0x4bc   : > { %966 = vmatmul.mubr.f32.gmra.mxu0 %v780_v62  ;;  %v1537_v21 = vpop.f32.mrf.mxu1 }
 0x4bd   : > { %970 = vmatprep.mubr.f32.mxu0 %v1531_v11 }
 0x4be   : > { %v882_v23 = vpop.f32.mrf.mxu1 }
 0x4c0   : > { %971 = vmatmul.mubr.f32.gmra.mxu0 %v781_v4 }
 0x4c1   : > { %975 = vmatprep.mubr.f32.mxu0 %v872_v17 }
 0x4c4   : > { %976 = vmatmul.mubr.f32.gmra.mxu0 %v782_v2 }
 0x4c5   : > { %980 = vmatprep.mubr.f32.mxu0 %v1534_v15 }
 0x4c8   : > { %981 = vmatmul.mubr.f32.gmra.mxu0 %v783_v54 }
 0x4c9   : > { %985 = vmatprep.mubr.f32.mxu0 %v882_v23 }
 0x4cc   : > { %986 = vmatmul.mubr.f32.gmra.mxu0 %v784_v51 }
 0x4cd   : > { %990 = vmatprep.mubr.f32.mxu0 %v1537_v21 }
 0x4d0   : > { %991 = vmatmul.mubr.f32.gmra.mxu0 %v785_v44 }
 0x574   : > { %v1430_v27 = vpop.f32.mrf.mxu0 }
 0x576   : > { %v1431_v59 = vpop.f32.mrf.mxu0 }
 0x577   : > { %v1432_v57 = vadd.f32 %v1431_v59, %v1430_v27 }
 0x578   : > { %v1433_v1 = vpop.f32.mrf.mxu0 }
 0x579   : > { %v958_v50 = vadd.f32 %v1432_v57, %v2166_v3 }
 0x57a   : > { %v1434_v46 = vpop.f32.mrf.mxu0 }
 0x57b   : > { %v1435_v56 = vadd.f32 %v1434_v46, %v1433_v1  ;;  %v996_v18 = vmax.f32 %v958_v50, 0.0 }
 0x57c   : > { %v1436_v8 = vpop.f32.mrf.mxu0 }
 0x57d   : > { %v963_v0 = vadd.f32 %v1435_v56, %v2166_v3  ;;  %v1004_v28 = vrot.slane %v996_v18, 4 }
 0x57e   : > { %v1437_v48 = vpop.f32.mrf.mxu0 }
 0x57f   : > { %v1438_v49 = vadd.f32 %v1437_v48, %v1436_v8  ;;  %v997_v14 = vmax.f32 %v963_v0, 0.0  ;;  %v1005_v37 = vadd.f32 %v1004_v28, %v996_v18 }
 0x580   : > { %v1439_v10 = vpop.f32.mrf.mxu0 }
 0x581   : > { %v968_v12 = vadd.f32 %v1438_v49, %v2166_v3  ;;  %v1010_v25 = vrot.slane %v997_v14, 4  ;;  %v1006_v52 = vrot.slane %v1005_v37, 2 }
 0x582   : > { %v1440_v13 = vpop.f32.mrf.mxu0 }
 0x583   : > { %v1441_v16 = vadd.f32 %v1440_v13, %v1439_v10  ;;  %v998_v19 = vmax.f32 %v968_v12, 0.0  ;;  %v1011_v35 = vadd.f32 %v1010_v25, %v997_v14  ;;  %v1007_v9 = vadd.f32 %v1006_v52, %v1005_v37 }
 0x584   : > { %v1442_v20 = vpop.f32.mrf.mxu0 }
 0x585   : > { %v973_v22 = vadd.f32 %v1441_v16, %v2166_v3  ;;  %v1016_v29 = vrot.slane %v998_v19, 4  ;;  %v1012_v45 = vrot.slane %v1011_v35, 2  ;;  %v1008_v57 = vrot.slane %v1007_v9, 1 }
 0x586   : > { %v1443_v24 = vpop.f32.mrf.mxu0 }
 0x587   : > { %v999_v26 = vmax.f32 %v973_v22, 0.0  ;;  %v1444_v30 = vadd.f32 %v1443_v24, %v1442_v20  ;;  %v1017_v38 = vadd.f32 %v1016_v29, %v998_v19  ;;  %v1013_v62 = vadd.f32 %v1012_v45, %v1011_v35 }
 0x588   : > { %v1445_v31 = vpop.f32.mrf.mxu0 }
 0x589   : > { %v1022_v32 = vrot.slane %v999_v26, 4  ;;  %v978_v33 = vadd.f32 %v1444_v30, %v2166_v3  ;;  %v1018_v53 = vrot.slane %v1017_v38, 2  ;;  %v1014_v27 = vrot.slane %v1013_v62, 1 }
 0x58a   : > { %v1446_v34 = vpop.f32.mrf.mxu0 }
 0x58b   : > { %v1447_v36 = vadd.f32 %v1446_v34, %v1445_v31  ;;  %v1000_v39 = vmax.f32 %v978_v33, 0.0  ;;  %v1023_v41 = vadd.f32 %v1022_v32, %v999_v26  ;;  %v1019_v11 = vadd.f32 %v1018_v53, %v1017_v38 }
 0x58c   : > { %v1448_v40 = vpop.f32.mrf.mxu0  ;;  %v1015_v50 = vadd.f32 %v1014_v27, %v1013_v62 }
 0x58d   : > { %v983_v42 = vadd.f32 %v1447_v36, %v2166_v3  ;;  %v1028_v43 = vrot.slane %v1000_v39, 4  ;;  %v1024_v7 = vrot.slane %v1023_v41, 2  ;;  %v1020_v56 = vrot.slane %v1019_v11, 1 }
 0x58e   : > { %v1449_v44 = vpop.f32.mrf.mxu0 }
 0x58f   : > { %v1001_v47 = vmax.f32 %v983_v42, 0.0  ;;  %v1450_v51 = vadd.f32 %v1449_v44, %v1448_v40  ;;  %v1029_v54 = vadd.f32 %v1028_v43, %v1000_v39  ;;  %v1025_v58 = vadd.f32 %v1024_v7, %v1023_v41 }
 0x590   : > { %v1451_v55 = vpop.f32.mrf.mxu0  ;;  %v1021_v14 = vadd.f32 %v1020_v56, %v1019_v11 }
 0x591   : > { %v1034_v2 = vrot.slane %v1001_v47, 4  ;;  %v988_v6 = vadd.f32 %v1450_v51, %v2166_v3  ;;  %v1030_v4 = vrot.slane %v1029_v54, 2  ;;  %v1026_v8 = vrot.slane %v1025_v58, 1 }
 0x592   : > { %v1452_v5 = vpop.f32.mrf.mxu0 }
 0x593   : > { %v1035_v60 = vadd.f32 %v1034_v2, %v1001_v47  ;;  %v1002_v61 = vmax.f32 %v988_v6, 0.0  ;;  %v1453_v63 = vadd.f32 %v1452_v5, %v1451_v55  ;;  %v1031_v23 = vadd.f32 %v1030_v4, %v1029_v54 }
 0x594   : > { %v1027_v16 = vadd.f32 %v1026_v8, %v1025_v58 }
 0x595   : > { %v1036_v15 = vrot.slane %v1035_v60, 2  ;;  %v1040_v17 = vrot.slane %v1002_v61, 4  ;;  %v993_v21 = vadd.f32 %v1453_v63, %v2166_v3  ;;  %v1032_v49 = vrot.slane %v1031_v23, 1 }
 0x596   : > { %v1009_v3 = vadd.f32 %v1008_v57, %v1007_v9 }
 0x597   : > { %v1037_v59 = vadd.f32 %v1036_v15, %v1035_v60  ;;  %v1041_v1 = vadd.f32 %v1040_v17, %v1002_v61  ;;  %v1003_v46 = vmax.f32 %v993_v21, 0.0  ;;  %v1033_v20 = vadd.f32 %v1032_v49, %v1031_v23 }
 0x598   : > { %v1061_v22 = vsel %vm1060_vm1, %v1015_v50, %v1009_v3 }
 0x599   : > { %v1042_v48 = vrot.slane %v1041_v1, 2  ;;  %v1046_v0 = vrot.slane %v1003_v46, 4  ;;  %v1038_v10 = vrot.slane %v1037_v59, 1  ;;  %v1063_v26 = vsel %vm1062_vm2, %v1021_v14, %v1061_v22 }
 0x59a   : > { %v1065_v29 = vsel %vm1064_vm3, %v1027_v16, %v1063_v26 }
 0x59b   : > { %v1043_v12 = vadd.f32 %v1042_v48, %v1041_v1  ;;  %v1047_v13 = vadd.f32 %v1046_v0, %v1003_v46  ;;  %v1039_v24 = vadd.f32 %v1038_v10, %v1037_v59  ;;  %v1067_v31 = vsel %vm1066_vm4, %v1033_v20, %v1065_v29 }
 0x59d   : > { %v1044_v18 = vrot.slane %v1043_v12, 1  ;;  %v1048_v19 = vrot.slane %v1047_v13, 2  ;;  %v1069_v33 = vsel %vm1068_vm5, %v1039_v24, %v1067_v31 }
 0x59f   : > { %v1049_v25 = vadd.f32 %v1048_v19, %v1047_v13  ;;  %v1045_v28 = vadd.f32 %v1044_v18, %v1043_v12 }
 0x5a1   : > { %v1050_v30 = vrot.slane %v1049_v25, 1  ;;  %v1071_v34 = vsel %vm1070_vm6, %v1045_v28, %v1069_v33 }
 0x5a3   : > { %v1051_v32 = vadd.f32 %v1050_v30, %v1049_v25 }
 0x5a5   : > { %v1073_v35 = vsel %vm1072_vm7, %v1051_v32, %v1071_v34 }
 0x5a6   : > { %1075 = vst [vmem:[%s269_s25] sm:$0xff] %v1073_v35 }
 0x5a7   : > { %1697 = shalt.err (!%p1694_p10)
}
 0x5a8   : > { %s1698_s9 = scalar_lea.hbm %s2319_s30, 128  ;;  %s1702_s20 = scalar_lea.hbm %s2360_s4, 256 }
 0x5a9   : > { %p1699_p1 = scmp.ne.s32.totalorder %s2319_s30, %s1698_s9  ;;  %p1703_p7 = scmp.lt.s32.totalorder %s2319_s30, %s2360_s4 }
 0x5aa   : > { %p1704_p8 = scmp.lt.s32.totalorder %s1702_s20, %s1698_s9 }
 0x5ab   : > { %p1700_p4 = pnand %p1699_p1, %p2393_p9 }
 0x5ac   : > { %p1705_p11 = por %p1704_p8, %p1703_p7 }
 0x5ad   : > { %p1701_p3 = pneg %p1700_p4 }
 0x5af   : > { %p1706_p6 = pnand %p1705_p11, %p1701_p3 }
 0x5b1   : > { %1709 = shalt.err (!%p1706_p6)
}
 0x5b2   : > { %1546 = dma.vmem_to_hbm [thread:$0]  (%p2393_p9), %s1091_s11, 128, %s2319_s30, %s1077_s13  }
 0x5b3 PF: > { %s1102_s7 = sand.u32 1, %s1744_s15   ;;  %p2394_p12 = scmp.ne.s32.totalorder %s2375_s22, 0 }
 0x5b4   : > { %p2395_p13 = scmp.ge.s32.totalorder %s1756_s18, 2  ;;  %s1103_s21 = scalar_lea.sflag [#allocation4], %s1102_s7 }
 0x5b6   : > { %p1560_p0 = pnand %p2395_p13, %p2394_p12 }
 0x5b8   : > { %p1561_p5 = pneg %p1560_p0 }
 0x5ba   : > { %1739 = dma.done.wait (%p1561_p5), %s1103_s21, 128  }
 0x5bb   : > { %1741 = vsyncadd (%p1561_p5), %s1103_s21, 4294967168  ;;  %s2396_s2 = sld [smem:[#allocation13_spill]]  ;;  %p20_p2 = scmp.ge.s32.totalorder %s1843_s27, 4  }
 0x5bc   : > { %s2397_s15 = smov %s1748_s16  ;;  %s2398_s16 = smov %s1752_s17 }
 0x5bd   : > { %s2400_s18 = smov %s1843_s27  ;;  %22 = sbr.rel (!%p20_p2) target bundleno = 10 (0xa), region = 98 }
 0x5c1   : > { %s2399_s17 = smov %s2396_s2 }
 0x5c2   :  { %1108 = vsyncpa [#allocation3], 1 }
 0x5c3   :  { %1110 = vsyncpa [#allocation3 + $0x1], 1 }
 0x5c4   :  { %1111 = vsyncpa [#allocation6], 1 }
 0x5c5   :  { %1113 = vsyncpa [#allocation6 + $0x1], 1 }
 0x5c6   :  { %1114 = vsyncpa [#allocation4], 1 }
 0x5c7   :  { %1116 = vsyncpa [#allocation4 + $0x1], 1 }

</bundles_post_ra>
